<compile_context>
chip_gen: v5e
topology: v5e:2x2
jax: 0.10.0
libtpu: 0.0.40
codegen_flags: <defaults>
</compile_context>

<pallas_src>
import jax
import jax.numpy as jnp
from jax.experimental import pallas as pl
from jax.experimental.pallas import tpu as pltpu

LANE = 128


def _stable_bce(x, y):
    """Elementwise numerically-stable BCE-with-logits (PyTorch formulation)."""
    x = x.astype(jnp.float32)
    y = y.astype(jnp.float32)
    return jnp.maximum(x, 0.0) - x * y + jnp.log1p(jnp.exp(-jnp.abs(x)))


def _generation_params():
    """Per-TPU-generation tiling knobs (safe conservative fallback)."""
    try:
        kind = jax.devices()[0].device_kind.lower()
    except Exception:
        kind = ""
    if "v7" in kind or "tpu7" in kind:
        # 2 TensorCores/chip, 3.2 TB/s HBM, 64 MiB physical VMEM:
        # 16 MiB of (x+y) per step -> 32 MiB double-buffered inputs.
        return dict(ncores=2, step_bytes=16 << 20, vmem_limit=48 << 20)
    if "v6" in kind:
        # single TC, 32 MiB scoped-VMEM default.
        return dict(ncores=1, step_bytes=8 << 20, vmem_limit=None)
    # v5e / unknown: single TC, 16 MiB scoped-VMEM default.
    return dict(ncores=1, step_bytes=4 << 20, vmem_limit=None)


def _make_bce_sum_kernel(rows_block, blocks_per_core, nblocks, sub, tail_rows,
                         has_dup):
    """Accumulate per-lane partial sums of stable BCE-with-logits.

    All tiling facts are static Python ints, so:
      * interior (full) blocks take an unmasked fast path,
      * only the ragged tail block (if any) masks rows with a block-local iota,
      * duplicated blocks from the clamped index_map are skipped via pl.when.
    """
    ragged = tail_rows != rows_block

    def _fold(loss):
        # (rows_block, LANE) -> (1, sub, LANE) using sublane-aligned vreg adds.
        if sub == 1:
            return loss.sum(axis=0, keepdims=True).reshape(1, 1, LANE)
        return (loss.reshape(rows_block // sub, sub, LANE)
                    .sum(axis=0).reshape(1, sub, LANE))

    def kernel(x_ref, y_ref, out_ref):
        c = pl.program_id(0)   # core split (parallel)
        i = pl.program_id(1)   # row-block loop (arbitrary / reduction)
        blk = c * blocks_per_core + i

        @pl.when(i == 0)
        def _():
            out_ref[...] = jnp.zeros_like(out_ref)

        n_full = nblocks - 1 if ragged else nblocks

        def fast_body():
            out_ref[...] += _fold(_stable_bce(x_ref[...], y_ref[...]))

        if ragged or has_dup:
            # Guard also skips duplicated blocks (blk >= nblocks).
            pl.when(blk < n_full)(fast_body)
        else:
            fast_body()

        if ragged:
            @pl.when(blk == nblocks - 1)
            def _():
                loss = _stable_bce(x_ref[...], y_ref[...])
                row_ok = (jax.lax.broadcasted_iota(
                    jnp.int32, (rows_block, LANE), 0) < tail_rows)
                out_ref[...] += _fold(jnp.where(row_ok, loss, 0.0))

    return kernel


def _bce_with_logits_mean(output, target, *, _rows_block=None, _ncores=None):
    """BCEWithLogitsLoss(reduction='mean') via a Pallas streaming reduction."""
    x_flat = output.reshape(-1)
    y_flat = target.reshape(-1)
    n = x_flat.shape[0]

    rows = n // LANE
    rem = n % LANE

    # Tiny problems (< one lane row) stay in plain jnp.
    if rows == 0:
        return jnp.sum(_stable_bce(x_flat, y_flat)) / jnp.float32(n)

    # Lane-ragged tail (<=127 elements) is computed in the wrapper; the kernel
    # only sees the lane-aligned prefix (no full-array pad/copy pass).
    if rem:
        aligned = rows * LANE
        tail_sum = jnp.sum(_stable_bce(x_flat[aligned:], y_flat[aligned:]))
        x_flat = x_flat[:aligned]
        y_flat = y_flat[:aligned]
    else:
        tail_sum = jnp.float32(0.0)

    x2 = x_flat.reshape(rows, LANE)
    y2 = y_flat.reshape(rows, LANE)

    gen = _generation_params()
    ncores_hw = _ncores if _ncores is not None else gen["ncores"]
    step_bytes = gen["step_bytes"]
    vmem_limit = gen["vmem_limit"]

    # Dtype-aware block size: biggest lane-dense block whose x+y tiles fit the
    # per-step VMEM budget, rounded down to a sublane (8) multiple.
    if _rows_block is not None:
        rows_budget = _rows_block
    else:
        itemsize_sum = x2.dtype.itemsize + y2.dtype.itemsize
        rows_budget = max(8, (step_bytes // (LANE * itemsize_sum)) // 8 * 8)
    rows_block = rows if rows <= rows_budget else rows_budget

    nblocks = -(-rows // rows_block)
    ncores = max(1, min(ncores_hw, nblocks))        # never fetch work twice
    blocks_per_core = -(-nblocks // ncores)
    has_dup = ncores * blocks_per_core > nblocks
    tail_rows = rows - (nblocks - 1) * rows_block   # rows valid in last block
    sub = 8 if rows_block % 8 == 0 else 1

    if has_dup:
        # Clamp so the DMA never goes out of range; the duplicated block is
        # skipped inside the kernel (blk >= nblocks).
        def in_map(c, i):
            return (jnp.minimum(c * blocks_per_core + i, nblocks - 1), 0)
    else:
        def in_map(c, i):
            return (c * blocks_per_core + i, 0)

    kernel = _make_bce_sum_kernel(rows_block, blocks_per_core, nblocks, sub,
                                  tail_rows, has_dup)

    bytes_in = x2.size * x2.dtype.itemsize + y2.size * y2.dtype.itemsize
    cost = pl.CostEstimate(flops=5 * n, transcendentals=2 * n,
                           bytes_accessed=bytes_in + ncores * sub * LANE * 4)

    partial = pl.pallas_call(
        kernel,
        out_shape=jax.ShapeDtypeStruct((ncores, sub, LANE), jnp.float32),
        grid=(ncores, blocks_per_core),
        in_specs=[
            pl.BlockSpec((rows_block, LANE), in_map),
            pl.BlockSpec((rows_block, LANE), in_map),
        ],
        out_specs=pl.BlockSpec((1, sub, LANE), lambda c, i: (c, 0, 0)),
        compiler_params=pltpu.CompilerParams(
            dimension_semantics=("parallel", "arbitrary"),
            vmem_limit_bytes=vmem_limit),
        cost_estimate=cost,
    )(x2, y2)

    # Final cross-lane / sublane reduce + divide once, in f32, in the wrapper.
    return (jnp.sum(partial) + tail_sum) / jnp.float32(n)


class BCE_Dice:
    """JAX/Pallas port of the PyTorch BCE_Dice module (forward only)."""

    def __init__(self, weight=None, size_average=True, alpha=0.01):
        self.alpha = alpha  # unused, mirrors the reference module (dead code)

    def __call__(self, output, target, **test_overrides):
        if output.ndim == target.ndim:
            return _bce_with_logits_mean(output, target, **test_overrides)
        # target.unsqueeze(1)
        return _bce_with_logits_mean(output, jnp.expand_dims(target, 1),
                                     **test_overrides)


def _ref_bce(output, target):
    x = output.astype(jnp.float32)
    y = target.astype(jnp.float32)
    if y.ndim != x.ndim:
        y = y[:, None]
    return jnp.mean(jnp.maximum(x, 0.0) - x * y + jnp.log1p(jnp.exp(-jnp.abs(x))))


if __name__ == "__main__":
    key = jax.random.PRNGKey(0)
    k1, k2, k3, k4, k5, k6 = jax.random.split(key, 6)

    loss_fn = BCE_Dice()

    # Case 1: typical segmentation shapes — logits (B,1,H,W), target (B,H,W)
    # (unsqueeze path; flat length lane-aligned, single block, 1 core).
    out1 = jax.random.normal(k1, (2, 1, 16, 16), dtype=jnp.float32)
    tgt1 = (jax.random.uniform(k2, (2, 16, 16)) > 0.5).astype(jnp.float32)
    loss1 = jax.block_until_ready(loss_fn(out1, tgt1))
    ref1 = _ref_bce(out1, tgt1)
    assert jnp.allclose(loss1, ref1, atol=1e-5, rtol=1e-5), (loss1, ref1)

    # Case 2: equal-ndim path, lane-ragged flat length (286 elements) and a
    # bf16 target — exercises the wrapper tail path + in-kernel dtype cast.
    out2 = jax.random.normal(k3, (2, 1, 13, 11), dtype=jnp.float32)
    tgt2 = (jax.random.uniform(k4, (2, 1, 13, 11)) > 0.5).astype(jnp.bfloat16)
    loss2 = jax.block_until_ready(loss_fn(out2, tgt2))
    ref2 = _ref_bce(out2, tgt2)
    assert jnp.allclose(loss2, ref2, atol=1e-5, rtol=1e-5), (loss2, ref2)

    # Case 3: multi-block path with forced small blocks + 2-core split —
    # exercises the interior fast path, the ragged-tail row mask, the
    # duplicated-block skip and the (8,128) fold. (rows=20, rows_block=8 ->
    # nblocks=3, ncores=2, blocks_per_core=2, 1 duplicated block.)
    out3 = jax.random.normal(k5, (2, 4, 16, 20), dtype=jnp.float32)
    tgt3 = (jax.random.uniform(k6, (2, 4, 16, 20)) > 0.5).astype(jnp.float32)
    loss3 = jax.block_until_ready(loss_fn(out3, tgt3, _rows_block=8, _ncores=2))
    ref3 = _ref_bce(out3, tgt3)
    assert jnp.allclose(loss3, ref3, atol=1e-5, rtol=1e-5), (loss3, ref3)

    print("KERNEL_OK")
</pallas_src>

<mosaic_0001>
module attributes {stable_mosaic.version = 11 : i64} {
  func.func @kernel(%arg0: i32, %arg1: i32, %arg2: memref<4x128xf32, #tpu.memory_space<vmem>>, %arg3: memref<4x128xf32, #tpu.memory_space<vmem>>, %arg4: memref<1x1x128xf32, #tpu.memory_space<vmem>>) attributes {dimension_semantics = [#tpu.dimension_semantics<parallel>, #tpu.dimension_semantics<arbitrary>], iteration_bounds = array<i64: 1, 1>, scalar_prefetch = 0 : i64, scratch_operands = 0 : i64, tpu.core_type = #tpu.core_type<tc>, window_params = [{transform_indices = @transform_0, window_bounds = array<i64: 4, 128>}, {transform_indices = @transform_1, window_bounds = array<i64: 4, 128>}, {transform_indices = @transform_2, window_bounds = array<i64: 1, 1, 128>}]} {
    %c0_i32 = arith.constant 0 : i32
    %0 = arith.cmpi eq, %arg1, %c0_i32 : i32
    %1 = arith.extui %0 : i1 to i32
    %c0_i32_0 = arith.constant 0 : i32
    %2 = arith.cmpi ne, %1, %c0_i32_0 : i32
    scf.if %2 {
      %cst_12 = arith.constant 0.000000e+00 : f32
      %21 = vector.broadcast %cst_12 : f32 to vector<1x1x128xf32>
      %c0_13 = arith.constant 0 : index
      %c0_14 = arith.constant 0 : index
      %c0_15 = arith.constant 0 : index
      %22 = vector.load %arg4[%c0_13, %c0_14, %c0_15] : memref<1x1x128xf32, #tpu.memory_space<vmem>>, vector<1x1x128xf32>
      tpu.vector_store %arg4[%c0_13, %c0_14, %c0_15], %21 {strides = array<i32>} : memref<1x1x128xf32, #tpu.memory_space<vmem>>, vector<1x1x128xf32>,
    } else {
    }
    %c0 = arith.constant 0 : index
    %c0_1 = arith.constant 0 : index
    %c0_2 = arith.constant 0 : index
    %3 = vector.load %arg4[%c0, %c0_1, %c0_2] : memref<1x1x128xf32, #tpu.memory_space<vmem>>, vector<1x1x128xf32>
    %c0_3 = arith.constant 0 : index
    %c0_4 = arith.constant 0 : index
    %4 = vector.load %arg2[%c0_3, %c0_4] : memref<4x128xf32, #tpu.memory_space<vmem>>, vector<4x128xf32>
    %c0_5 = arith.constant 0 : index
    %c0_6 = arith.constant 0 : index
    %5 = vector.load %arg3[%c0_5, %c0_6] : memref<4x128xf32, #tpu.memory_space<vmem>>, vector<4x128xf32>
    %cst = arith.constant 0.000000e+00 : f32
    %6 = vector.broadcast %cst : f32 to vector<4x128xf32>
    %7 = arith.maximumf %4, %6 : vector<4x128xf32>
    %8 = arith.mulf %4, %5 : vector<4x128xf32>
    %9 = arith.subf %7, %8 : vector<4x128xf32>
    %10 = math.absf %4 : vector<4x128xf32>
    %cst_7 = arith.constant 0.000000e+00 : f32
    %11 = vector.broadcast %cst_7 : f32 to vector<4x128xf32>
    %12 = arith.subf %11, %10 : vector<4x128xf32>
    %13 = math.exp %12 : vector<4x128xf32>
    %14 = math.log1p %13 : vector<4x128xf32>
    %15 = arith.addf %9, %14 : vector<4x128xf32>
    %cst_8 = arith.constant dense<0.000000e+00> : vector<128xf32>
    %16 = vector.multi_reduction <add>, %15, %cst_8 [0] : vector<4x128xf32> to vector<128xf32>
    %17 = vector.shape_cast %16 : vector<128xf32> to vector<1x128xf32>
    %18 = vector.shape_cast %17 : vector<1x128xf32> to vector<1x1x128xf32>
    %19 = arith.addf %3, %18 : vector<1x1x128xf32>
    %c0_9 = arith.constant 0 : index
    %c0_10 = arith.constant 0 : index
    %c0_11 = arith.constant 0 : index
    %20 = vector.load %arg4[%c0_9, %c0_10, %c0_11] : memref<1x1x128xf32, #tpu.memory_space<vmem>>, vector<1x1x128xf32>
    tpu.vector_store %arg4[%c0_9, %c0_10, %c0_11], %19 {strides = array<i32>} : memref<1x1x128xf32, #tpu.memory_space<vmem>>, vector<1x1x128xf32>,
    return
  }
  func.func @transform_0(%arg0: i32, %arg1: i32) -> (i32, i32) {
    %c1_i32 = arith.constant 1 : i32
    %0 = arith.muli %arg0, %c1_i32 : i32
    %1 = arith.addi %0, %arg1 : i32
    %c0_i32 = arith.constant 0 : i32
    %c0_i32_0 = arith.constant 0 : i32
    return %1, %c0_i32 : i32, i32
  }
  func.func @transform_1(%arg0: i32, %arg1: i32) -> (i32, i32) {
    %c1_i32 = arith.constant 1 : i32
    %0 = arith.muli %arg0, %c1_i32 : i32
    %1 = arith.addi %0, %arg1 : i32
    %c0_i32 = arith.constant 0 : i32
    %c0_i32_0 = arith.constant 0 : i32
    return %1, %c0_i32 : i32, i32
  }
  func.func @transform_2(%arg0: i32, %arg1: i32) -> (i32, i32, i32) {
    %c0_i32 = arith.constant 0 : i32
    %c0_i32_0 = arith.constant 0 : i32
    %c0_i32_1 = arith.constant 0 : i32
    return %arg0, %c0_i32, %c0_i32_0 : i32, i32, i32
  }
}

</mosaic_0001>

<bundles_post_ra>
// kernel: tpu_custom_call.1
= control target key start
LH: loop header
LB: loop body
LE: loop exit
PB: predicated region body
PF: predicated region fallthrough
CT: control target
= control target key end

     0   :  { %7 = vsyncpa [#allocation3], 0  ;;  %s215_s0 = inlined_call_operand.hbm [shape: f32[4,128], index: 0, kind: input, shape index: {}]   ;;  %s216_s1 = inlined_call_operand.hbm [shape: f32[4,128], index: 1, kind: input, shape index: {}]   ;;  %s217_s2 = inlined_call_operand.hbm [shape: f32[1,1,128], index: 2, kind: output, shape index: {}]  }
   0x1   :  { %8 = vsyncpa [#allocation6], 0 }
   0x2   :  { %9 = vsyncpa [#allocation4], 0  ;;  %s18_s11 = sshll.u32 %s215_s0, 4  ;;  %s187_s12 = smov [#allocation2]   ;;  %s19_s11 = int_to_ptr.hbm [resolvable:$true] %s18_s11 }
   0x3   :  { %s20_s13 = sshll.u32 %s187_s12, 4  ;;  %s32_s16 = sshll.u32 %s216_s1, 4  ;;  %s21_s13 = int_to_ptr.vmem [resolvable:$true] %s20_s13  ;;  %s33_s16 = int_to_ptr.hbm [resolvable:$true] %s32_s16 }
   0x4   :  { %23 = dma.hbm_to_vmem [thread:$0]  %s19_s11, 64, %s21_s13, [#allocation3]  }
   0x5   :  { %s188_s17 = smov [#allocation5]  }
   0x6   :  { %s34_s18 = sshll.u32 %s188_s17, 4  ;;  %s35_s18 = int_to_ptr.vmem [resolvable:$true] %s34_s18 }
   0x7   :  { %37 = dma.hbm_to_vmem [thread:$0]  %s33_s16, 64, %s35_s18, [#allocation6]  }
   0x8   :  { %181 = dma.done.wait [#allocation3], 64  }
   0x9   :  { %182 = vsyncadd [#allocation3], 4294967232 }
   0xa   :  { %183 = dma.done.wait [#allocation6], 64  }
   0xb   :  { %184 = vsyncadd [#allocation6], 4294967232  ;;  %v189_v0 = vmov 0.0   ;;  %v54_v1 = vld [vmem:[#allocation2] sm:$0xf]  ;;  %vm73_vm1 = vcmask 1043456  }
   0xc   :  { %52 = vst [vmem:[#allocation7] sm:$0x1] %v189_v0  ;;  %v59_v2 = vand.u32 2147483647, %v54_v1  ;;  %v55_v8 = vld [vmem:[#allocation5] sm:$0xf] }
   0xd   :  { %v56_v10 = vmax.f32 %v54_v1, 0.0  ;;  %v57_v11 = vmul.f32 %v55_v8, %v54_v1  ;;  %s190_s0 = smov [#allocation7]   ;;  %s90_s21 = sshll.u32 %s217_s2, 4  ;;  %s91_s21 = int_to_ptr.hbm [resolvable:$true] %s90_s21 }
   0xe   :  { %v60_v3 = vsub.f32 0.0, %v59_v2  ;;  %s88_s1 = sshll.u32 %s190_s0, 4  ;;  %s89_s1 = int_to_ptr.vmem [resolvable:$true] %s88_s1 }
   0xf   :  { %v58_v15 = vsub.f32 %v56_v10, %v57_v11 }
  0x10   :  { %v61_v4 = vmul.f32 1.442695, %v60_v3 }
  0x12   :  { %105 = vpow2.f32 %v61_v4 }
  0x13   :  { %v53_v25 = vld [vmem:[#allocation7] sm:$0x1] }
  0x18   :  { %v106_v5 = vpop.eup %105 }
  0x19   :  { %v63_v6 = vadd.f32 1.0, %v106_v5  ;;  %v66_v7 = vmul.f32 -0.5, %v106_v5  ;;  %v69_v12 = vand.u32 2147483647, %v106_v5 }
  0x1b   :  { %107 = vlog2.f32 %v63_v6  ;;  %v67_v9 = vadd.f32 1.0, %v66_v7  ;;  %vm70_vm0 = vcmp.lt.f32.partialorder %v69_v12, 0.0004427343 }
  0x1d   :  { %v68_v13 = vmul.f32 %v106_v5, %v67_v9 }
  0x21   :  { %v108_v14 = vpop.eup %107 }
  0x22   :  { %v65_v16 = vmul.f32 0.6931472, %v108_v14 }
  0x24   :  { %v71_v17 = vsel %vm70_vm0, %v68_v13, %v65_v16 }
  0x25   :  { %v72_v18 = vadd.f32 %v71_v17, %v58_v15 }
  0x27   :  { %v74_v19 = vsel %vm73_vm1, %v72_v18, 0.0 }
  0x28   :  { %v75_v20 = vrot.slane %v74_v19, 4 }
  0x2a   :  { %v76_v21 = vadd.f32 %v75_v20, %v74_v19 }
  0x2c   :  { %v77_v22 = vrot.slane %v76_v21, 2 }
  0x2e   :  { %v78_v23 = vadd.f32 %v77_v22, %v76_v21 }
  0x30   :  { %v79_v24 = vrot.slane %v78_v23, 1 }
  0x32   :  { %v80_v26 = vadd.f32 %v79_v24, %v78_v23 }
  0x34   :  { %v81_v27 = vadd.f32 %v80_v26, %v53_v25 }
  0x36   :  { %82 = vst [vmem:[#allocation7] sm:$0x1] %v81_v27 }
  0x37   :  { %93 = dma.vmem_to_hbm [thread:$0]  %s89_s1, 16, %s91_s21, [#allocation4]  }
  0x38   :  { %185 = dma.done.wait [#allocation4], 16  }
  0x39   :  { %186 = vsyncadd [#allocation4], 4294967280 }
  0x3a   :  { %98 = vsyncpa [#allocation3], 1 }
  0x3b   :  { %99 = vsyncpa [#allocation6], 1 }
  0x3c   :  { %100 = vsyncpa [#allocation4], 1 }

</bundles_post_ra>
